<compile_context>
chip_gen: v7x
topology: tpu7x:2x2x1
jax: 0.10.0
libtpu: 0.0.40
codegen_flags: <defaults>
</compile_context>

<pallas_src>
import functools

import jax
import jax.numpy as jnp
import numpy as np
from jax.experimental import pallas as pl
from jax.experimental.pallas import tpu as pltpu

INPUT_SIZE = 784
HIDDEN = 300
NUM_CLASSES = 10

# Lane-padded (multiples of 128) shapes used inside the kernel.
HID_PAD = 384    # 3 * 128
OUT_PAD = 128    # 1 * 128


def _round_up(n, m):
    return ((n + m - 1) // m) * m


def _pick_tb(B):
    """Largest sublane-aligned batch tile with <=~10% padding; >=2 grid steps
    once the (padded) batch reaches 512 so v7x shards across both TCs."""
    for tb in (1024, 512, 256, 128, 64, 32, 16, 8):
        b_pad = _round_up(B, tb)
        if (b_pad - B) > max(B // 10, 7):
            continue
        if b_pad >= 512 and (b_pad // tb) < 2:
            continue
        return tb
    return 8


def mlp_kernel(x_ref, w1_ref, b1_ref, w2_ref, b2_ref, o_ref):
    # Cast x f32 -> bf16 in-kernel (VPU slot is otherwise idle); if x already
    # arrives in bf16 this is a no-op cast.
    x_bf = x_ref[...].astype(jnp.bfloat16)
    # l1: (TB, 784) bf16 @ (784, 384) bf16 -> f32 accumulate on the MXU.
    h = jnp.dot(x_bf, w1_ref[...], preferred_element_type=jnp.float32)
    # bias + ReLU in f32 on the VPU (v5e has no bf16 VPU).
    h = jnp.maximum(h + b1_ref[...], 0.0)
    # l2: (TB, 384) bf16 @ (384, 128) bf16 -> f32 accumulate.
    out = jnp.dot(h.astype(jnp.bfloat16), w2_ref[...],
                  preferred_element_type=jnp.float32)
    # Lane-dense (TB, 128) store; real logits are columns [:10].
    o_ref[...] = (out + b2_ref[...]).astype(o_ref.dtype)


def prepare_params(w1, b1, w2, b2):
    """One-time weight prep (pad + bf16 cast).  Call once; reuse the returned
    device arrays for every forward call."""
    bf16 = jnp.bfloat16
    b1 = jnp.asarray(b1, jnp.float32).reshape(1, HIDDEN)
    b2 = jnp.asarray(b2, jnp.float32).reshape(1, NUM_CLASSES)
    # W1 keeps its natural K=784; only the N dims are lane-padded.  Padded
    # rows/cols are zero so the sliced [:B, :10] logits are unchanged.
    w1p = jnp.zeros((INPUT_SIZE, HID_PAD), bf16).at[:, :HIDDEN].set(
        jnp.asarray(w1, jnp.float32).astype(bf16))
    b1p = jnp.zeros((1, HID_PAD), jnp.float32).at[:, :HIDDEN].set(b1)
    w2p = jnp.zeros((HID_PAD, OUT_PAD), bf16).at[:HIDDEN, :NUM_CLASSES].set(
        jnp.asarray(w2, jnp.float32).astype(bf16))
    b2p = jnp.zeros((1, OUT_PAD), jnp.float32).at[:, :NUM_CLASSES].set(b2)
    return (jax.device_put(w1p), jax.device_put(b1p),
            jax.device_put(w2p), jax.device_put(b2p))


@functools.partial(jax.jit, static_argnames=("slice_output",))
def neuralnet_forward(x, w1p, b1p, w2p, b2p, *, slice_output=True):
    """x: (B, 784) f32 or bf16; w1p/b1p/w2p/b2p: outputs of prepare_params().

    Returns (B, 10) logits (or the padded (b_pad, 128) buffer — real logits in
    columns [:10] — if slice_output=False, saving the output re-copy)."""
    B = x.shape[0]
    tb = _pick_tb(B)
    b_pad = _round_up(B, tb)

    # Only pad the batch axis, and only when actually needed (no padded copy of
    # x in the common B % tb == 0 case).
    xk = x if b_pad == B else jnp.pad(x, ((0, b_pad - B), (0, 0)))

    cost = pl.CostEstimate(
        flops=2 * b_pad * (INPUT_SIZE * HID_PAD + HID_PAD * OUT_PAD),
        transcendentals=0,
        bytes_accessed=(xk.size * xk.dtype.itemsize
                        + w1p.size * 2 + w2p.size * 2
                        + b1p.size * 4 + b2p.size * 4
                        + b_pad * OUT_PAD * 4),
    )

    out_padded = pl.pallas_call(
        mlp_kernel,
        out_shape=jax.ShapeDtypeStruct((b_pad, OUT_PAD), jnp.float32),
        grid=(b_pad // tb,),
        in_specs=[
            # x: batch-tiled; last dim 784 equals the full array dim (legal).
            pl.BlockSpec((tb, INPUT_SIZE), lambda i: (i, 0)),
            pl.BlockSpec((INPUT_SIZE, HID_PAD), lambda i: (0, 0)),  # w1: resident
            pl.BlockSpec((1, HID_PAD), lambda i: (0, 0)),           # b1: resident
            pl.BlockSpec((HID_PAD, OUT_PAD), lambda i: (0, 0)),     # w2: resident
            pl.BlockSpec((1, OUT_PAD), lambda i: (0, 0)),           # b2: resident
        ],
        out_specs=pl.BlockSpec((tb, OUT_PAD), lambda i: (i, 0)),
        compiler_params=pltpu.CompilerParams(
            dimension_semantics=("parallel",),   # v7x: shard batch across 2 TCs
        ),
        cost_estimate=cost,
    )(xk, w1p, b1p, w2p, b2p)

    if slice_output:
        return out_padded[:B, :NUM_CLASSES]
    return out_padded


def init_params(key):
    # Mimic PyTorch nn.Linear default init: U(-1/sqrt(fan_in), 1/sqrt(fan_in)).
    k1, k2, k3, k4 = jax.random.split(key, 4)
    bound1 = 1.0 / np.sqrt(INPUT_SIZE)
    bound2 = 1.0 / np.sqrt(HIDDEN)
    w1 = jax.random.uniform(k1, (INPUT_SIZE, HIDDEN), jnp.float32,
                            minval=-bound1, maxval=bound1)
    b1 = jax.random.uniform(k2, (1, HIDDEN), jnp.float32,
                            minval=-bound1, maxval=bound1)
    w2 = jax.random.uniform(k3, (HIDDEN, NUM_CLASSES), jnp.float32,
                            minval=-bound2, maxval=bound2)
    b2 = jax.random.uniform(k4, (1, NUM_CLASSES), jnp.float32,
                            minval=-bound2, maxval=bound2)
    return w1, b1, w2, b2


if __name__ == "__main__":
    key = jax.random.PRNGKey(0)
    k_x, k_p = jax.random.split(key)

    batch = 8  # small batch of flattened 28x28 MNIST images
    x = jax.random.normal(k_x, (batch, INPUT_SIZE), dtype=jnp.float32)
    w1, b1, w2, b2 = init_params(k_p)

    # One-time weight prep (hoisted out of the per-call path).
    w1p, b1p, w2p, b2p = prepare_params(w1, b1, w2, b2)

    out = neuralnet_forward(x, w1p, b1p, w2p, b2p)
    out = jax.block_until_ready(out)
    assert out.shape == (batch, NUM_CLASSES)

    # Pure-JAX reference with the same bf16-input / f32-accumulate recipe.
    bf16 = jnp.bfloat16
    ref_h = jnp.maximum(
        jnp.dot(x.astype(bf16), w1.astype(bf16),
                preferred_element_type=jnp.float32) + b1, 0.0)
    ref = jnp.dot(ref_h.astype(bf16), w2.astype(bf16),
                  preferred_element_type=jnp.float32) + b2
    np.testing.assert_allclose(np.asarray(out), np.asarray(ref),
                               rtol=1e-2, atol=1e-2)

    # Looser sanity check against the full-f32 math (bf16 rounding only).
    ref_f32 = jnp.maximum(x @ w1 + b1, 0.0) @ w2 + b2
    np.testing.assert_allclose(np.asarray(out), np.asarray(ref_f32),
                               rtol=5e-2, atol=5e-2)

    # Exercise a ragged, larger batch to cover the adaptive-tile / pad path.
    x_big = jax.random.normal(k_x, (260, INPUT_SIZE), dtype=jnp.float32)
    out_big = jax.block_until_ready(neuralnet_forward(x_big, w1p, b1p, w2p, b2p))
    ref_big = jnp.maximum(x_big @ w1 + b1, 0.0) @ w2 + b2
    assert out_big.shape == (260, NUM_CLASSES)
    np.testing.assert_allclose(np.asarray(out_big), np.asarray(ref_big),
                               rtol=5e-2, atol=5e-2)

    print("KERNEL_OK")
</pallas_src>

<mosaic_0001>
module attributes {stable_mosaic.version = 11 : i64} {
  func.func @mlp_kernel(%arg0: i32, %arg1: memref<8x784xf32, #tpu.memory_space<vmem>>, %arg2: memref<784x384xbf16, #tpu.memory_space<vmem>>, %arg3: memref<1x384xf32, #tpu.memory_space<vmem>>, %arg4: memref<384x128xbf16, #tpu.memory_space<vmem>>, %arg5: memref<1x128xf32, #tpu.memory_space<vmem>>, %arg6: memref<8x128xf32, #tpu.memory_space<vmem>>) attributes {dimension_semantics = [#tpu.dimension_semantics<parallel>], iteration_bounds = array<i64: 1>, scalar_prefetch = 0 : i64, scratch_operands = 0 : i64, tpu.core_type = #tpu.core_type<tc>, window_params = [{transform_indices = @transform_0, window_bounds = array<i64: 8, 784>}, {pipeline_mode = #tpu.pipeline_mode<synchronous>, transform_indices = @transform_1, window_bounds = array<i64: 784, 384>}, {pipeline_mode = #tpu.pipeline_mode<synchronous>, transform_indices = @transform_2, window_bounds = array<i64: 1, 384>}, {pipeline_mode = #tpu.pipeline_mode<synchronous>, transform_indices = @transform_3, window_bounds = array<i64: 384, 128>}, {pipeline_mode = #tpu.pipeline_mode<synchronous>, transform_indices = @transform_4, window_bounds = array<i64: 1, 128>}, {transform_indices = @transform_5, window_bounds = array<i64: 8, 128>}]} {
    %c0 = arith.constant 0 : index
    %c0_0 = arith.constant 0 : index
    %0 = vector.load %arg1[%c0, %c0_0] : memref<8x784xf32, #tpu.memory_space<vmem>>, vector<8x784xf32>
    %1 = arith.truncf %0 : vector<8x784xf32> to vector<8x784xbf16>
    %c0_1 = arith.constant 0 : index
    %c0_2 = arith.constant 0 : index
    %2 = vector.load %arg2[%c0_1, %c0_2] : memref<784x384xbf16, #tpu.memory_space<vmem>>, vector<784x384xbf16>
    %cst = arith.constant dense<0.000000e+00> : vector<8x384xf32>
    %3 = tpu.matmul %1, %2, %cst {dimension_numbers = #tpu.dot_dimension_numbers<[1], [0], [0], [1], [0, 0, 1, 1], [], []>} : vector<8x784xbf16>, vector<784x384xbf16>, vector<8x384xf32> -> vector<8x384xf32>
    %c0_3 = arith.constant 0 : index
    %c0_4 = arith.constant 0 : index
    %4 = vector.load %arg3[%c0_3, %c0_4] : memref<1x384xf32, #tpu.memory_space<vmem>>, vector<1x384xf32>
    %5 = vector.broadcast %4 : vector<1x384xf32> to vector<8x384xf32>
    %6 = arith.addf %3, %5 : vector<8x384xf32>
    %cst_5 = arith.constant 0.000000e+00 : f32
    %7 = vector.broadcast %cst_5 : f32 to vector<8x384xf32>
    %8 = arith.maximumf %6, %7 : vector<8x384xf32>
    %9 = arith.truncf %8 : vector<8x384xf32> to vector<8x384xbf16>
    %c0_6 = arith.constant 0 : index
    %c0_7 = arith.constant 0 : index
    %10 = vector.load %arg4[%c0_6, %c0_7] : memref<384x128xbf16, #tpu.memory_space<vmem>>, vector<384x128xbf16>
    %cst_8 = arith.constant dense<0.000000e+00> : vector<8x128xf32>
    %11 = tpu.matmul %9, %10, %cst_8 {dimension_numbers = #tpu.dot_dimension_numbers<[1], [0], [0], [1], [0, 0, 1, 1], [], []>} : vector<8x384xbf16>, vector<384x128xbf16>, vector<8x128xf32> -> vector<8x128xf32>
    %c0_9 = arith.constant 0 : index
    %c0_10 = arith.constant 0 : index
    %12 = vector.load %arg5[%c0_9, %c0_10] : memref<1x128xf32, #tpu.memory_space<vmem>>, vector<1x128xf32>
    %13 = vector.broadcast %12 : vector<1x128xf32> to vector<8x128xf32>
    %14 = arith.addf %11, %13 : vector<8x128xf32>
    %c0_11 = arith.constant 0 : index
    %c0_12 = arith.constant 0 : index
    %15 = vector.load %arg6[%c0_11, %c0_12] : memref<8x128xf32, #tpu.memory_space<vmem>>, vector<8x128xf32>
    tpu.vector_store %arg6[%c0_11, %c0_12], %14 {strides = array<i32>} : memref<8x128xf32, #tpu.memory_space<vmem>>, vector<8x128xf32>,
    return
  }
  func.func @transform_0(%arg0: i32) -> (i32, i32) {
    %c0_i32 = arith.constant 0 : i32
    %c0_i32_0 = arith.constant 0 : i32
    return %arg0, %c0_i32 : i32, i32
  }
  func.func @transform_1(%arg0: i32) -> (i32, i32) {
    %c0_i32 = arith.constant 0 : i32
    %c0_i32_0 = arith.constant 0 : i32
    %c0_i32_1 = arith.constant 0 : i32
    return %c0_i32, %c0_i32_0 : i32, i32
  }
  func.func @transform_2(%arg0: i32) -> (i32, i32) {
    %c0_i32 = arith.constant 0 : i32
    %c0_i32_0 = arith.constant 0 : i32
    %c0_i32_1 = arith.constant 0 : i32
    return %c0_i32, %c0_i32_0 : i32, i32
  }
  func.func @transform_3(%arg0: i32) -> (i32, i32) {
    %c0_i32 = arith.constant 0 : i32
    %c0_i32_0 = arith.constant 0 : i32
    %c0_i32_1 = arith.constant 0 : i32
    return %c0_i32, %c0_i32_0 : i32, i32
  }
  func.func @transform_4(%arg0: i32) -> (i32, i32) {
    %c0_i32 = arith.constant 0 : i32
    %c0_i32_0 = arith.constant 0 : i32
    %c0_i32_1 = arith.constant 0 : i32
    return %c0_i32, %c0_i32_0 : i32, i32
  }
  func.func @transform_5(%arg0: i32) -> (i32, i32) {
    %c0_i32 = arith.constant 0 : i32
    %c0_i32_0 = arith.constant 0 : i32
    return %arg0, %c0_i32 : i32, i32
  }
}

</mosaic_0001>

<bundles_post_ra>
// kernel: neuralnet_forward.1
= control target key start
LH: loop header
LB: loop body
LE: loop exit
PB: predicated region body
PF: predicated region fallthrough
CT: control target
= control target key end

     0   :  { %10 = vsyncpa [#allocation3], 0  ;;  %s2460_s0 = inlined_call_operand.hbm [shape: f32[8,784], index: 0, kind: input, shape index: {}]   ;;  %s2461_s1 = inlined_call_operand.hbm [shape: bf16[784,384], index: 1, kind: input, shape index: {}]   ;;  %s2462_s2 = inlined_call_operand.vmem [shape: f32[1,384], index: 2, kind: input, shape index: {}]   ;;  %s2463_s3 = inlined_call_operand.hbm [shape: bf16[384,128], index: 3, kind: input, shape index: {}]   ;;  %s2464_s4 = inlined_call_operand.vmem [shape: f32[1,128], index: 4, kind: input, shape index: {}]   ;;  %s2465_s5 = inlined_call_operand.hbm [shape: f32[8,128], index: 5, kind: output, shape index: {}]  }
   0x1   :  { %11 = vsyncpa [#allocation6], 0 }
   0x2   :  { %12 = vsyncpa [#allocation4], 0  ;;  %s2338_s18 = smov [#allocation5]   ;;  %s2244_s22 = scalar_lea.hbm %s2461_s1, 18816 }
   0x3   :  { %s28_s19 = sshll.u32 %s2338_s18, 4  ;;  %p2245_p0 = scmp.ne.s32.totalorder %s2461_s1, %s2244_s22  ;;  %s29_s19 = int_to_ptr.vmem [resolvable:$true] %s28_s19 }
   0x4   :  { %p2248_p1 = scmp.lt.u32.totalorder %s2244_s22, %s2461_s1 }
   0x6   :  { %p2250_p2 = pnand %p2248_p1, %p2245_p0 }
   0x8   :  { %2253 = shalt.err (!%p2250_p2)
}
   0x9   :  { %s2254_s27 = scalar_lea.vmem %s29_s19, 18816  ;;  %p2259_p4 = scmp.lt.s32.totalorder %s29_s19, %s29_s19 }
   0xa   :  { %p2255_p3 = scmp.ne.s32.totalorder %s29_s19, %s2254_s27  ;;  %p2260_p5 = scmp.lt.s32.totalorder %s2254_s27, %s2254_s27 }
   0xc   :  { %p2261_p6 = por %p2260_p5, %p2259_p4 }
   0xe   :  { %p2262_p7 = pnand %p2261_p6, %p2255_p3 }
  0x10   :  { %2265 = shalt.err (!%p2262_p7)
}
  0x11   :  { %s2339_s28 = smov 192   ;;  %s2340_s29 = smov 12  }
  0x12   :  { %34 = dma.hbm_to_vmem [thread:$0]  %s2461_s1, 18816, %s29_s19, [#allocation6], %s2339_s28, %s2339_s28, %s2340_s29  }
  0x13   :  { %s2341_s7 = smov [#allocation2]   ;;  %s2342_s9 = smov [#allocation7]  }
  0x14   :  { %s19_s8 = sshll.u32 %s2341_s7, 4  ;;  %s42_s10 = sshll.u32 %s2342_s9, 4  ;;  %s20_s8 = int_to_ptr.vmem [resolvable:$true] %s19_s8  ;;  %s43_s10 = int_to_ptr.vmem [resolvable:$true] %s42_s10 }
  0x15   :  { %s2266_s13 = scalar_lea.hbm %s2460_s0, 896 }
  0x16   :  { %p2267_p8 = scmp.ne.s32.totalorder %s2460_s0, %s2266_s13  ;;  %p2270_p9 = scmp.lt.u32.totalorder %s2266_s13, %s2460_s0 }
  0x18   :  { %p2272_p10 = pnand %p2270_p9, %p2267_p8 }
  0x1a   :  { %2275 = shalt.err (!%p2272_p10)
}
  0x1b   :  { %s2276_s1 = scalar_lea.vmem %s20_s8, 896  ;;  %p2281_p12 = scmp.lt.s32.totalorder %s20_s8, %s20_s8 }
  0x1c   :  { %p2277_p11 = scmp.ne.s32.totalorder %s20_s8, %s2276_s1  ;;  %p2282_p13 = scmp.lt.s32.totalorder %s2276_s1, %s2276_s1 }
  0x1e   :  { %p2283_p0 = por %p2282_p13, %p2281_p12 }
  0x20   :  { %p2284_p1 = pnand %p2283_p0, %p2277_p11 }
  0x22   :  { %2287 = shalt.err (!%p2284_p1)
}
  0x23   :  { %22 = dma.hbm_to_vmem [thread:$0]  %s2460_s0, 896, %s20_s8, [#allocation3]  }
  0x24   :  { %s2288_s22 = scalar_lea.hbm %s2463_s3, 3072 }
  0x25   :  { %p2289_p2 = scmp.ne.s32.totalorder %s2463_s3, %s2288_s22  ;;  %p2292_p3 = scmp.lt.u32.totalorder %s2288_s22, %s2463_s3 }
  0x27   :  { %p2294_p4 = pnand %p2292_p3, %p2289_p2 }
  0x29   :  { %2297 = shalt.err (!%p2294_p4)
}
  0x2a   :  { %s2298_s27 = scalar_lea.vmem %s43_s10, 3072  ;;  %p2303_p6 = scmp.lt.s32.totalorder %s43_s10, %s43_s10 }
  0x2b   :  { %p2299_p5 = scmp.ne.s32.totalorder %s43_s10, %s2298_s27  ;;  %p2304_p7 = scmp.lt.s32.totalorder %s2298_s27, %s2298_s27 }
  0x2d   :  { %p2305_p8 = por %p2304_p7, %p2303_p6 }
  0x2f   :  { %p2306_p9 = pnand %p2305_p8, %p2299_p5 }
  0x31   :  { %2309 = shalt.err (!%p2306_p9)
}
  0x32   :  { %s2343_s0 = smov 64   ;;  %s2344_s28 = smov 4  }
  0x33   :  { %48 = dma.hbm_to_vmem [thread:$0]  %s2463_s3, 3072, %s43_s10, [#allocation6], %s2343_s0, %s2343_s0, %s2344_s28  }
  0x34   :  { %2332 = dma.done.wait [#allocation3], 896  }
  0x35   :  { %2333 = vsyncadd [#allocation3], 4294966400 }
  0x36   :  { %2334 = dma.done.wait [#allocation6], 21888  }
  0x37   :  { %2335 = vsyncadd [#allocation6], 4294945408  ;;  %v2345_v0 = vmov 0   ;;  %v2024_v1 = vld [vmem:[#allocation5 + $0x4] ss:$12 sps:$4 sm:$0xff]   ;;  %v67_v18 = vld [vmem:[#allocation2 + $0x30] sm:$0xff] }
  0x38   :  { %1231 = vmatprep.mubr.bf16.mxu1 %v2345_v0  ;;  %v2026_v2 = vld [vmem:[#allocation5] ss:$12 sps:$4 sm:$0xff]   ;;  %1076 = vmatprep.subr.bf16.mxu0 %v2024_v1  ;;  %v2027_v3 = vld [vmem:[#allocation5 + $0x1c] ss:$12 sps:$4 sm:$0xff]   ;;  %v2029_v4 = vld [vmem:[#allocation5 + $0x18] ss:$12 sps:$4 sm:$0xff]   ;;  %v2415_v20 = vpack.c.bf16 %v67_v18, %v67_v18 }
  0x39   :  { %1077 = vmatpush1.bf16.msra.mxu0 %v2026_v2  ;;  %v2030_v5 = vld [vmem:[#allocation5 + $0x34] ss:$12 sps:$4 sm:$0xff]   ;;  %v2032_v6 = vld [vmem:[#allocation5 + $0x30] ss:$12 sps:$4 sm:$0xff]   ;;  %v2033_v7 = vld [vmem:[#allocation5 + $0x4c] ss:$12 sps:$4 sm:$0xff]  }
  0x3a   :  { %1078 = vmatprep.subr.bf16.mxu0 %v2027_v3  ;;  %v2035_v8 = vld [vmem:[#allocation5 + $0x48] ss:$12 sps:$4 sm:$0xff]   ;;  %v2036_v9 = vld [vmem:[#allocation5 + $0x64] ss:$12 sps:$4 sm:$0xff]   ;;  %v2038_v10 = vld [vmem:[#allocation5 + $0x60] ss:$12 sps:$4 sm:$0xff]  }
  0x3b   :  { %v2039_v11 = vld [vmem:[#allocation5 + $0x7c] ss:$12 sps:$4 sm:$0xff]   ;;  %v2041_v12 = vld [vmem:[#allocation5 + $0x78] ss:$12 sps:$4 sm:$0xff]   ;;  %v2042_v14 = vld [vmem:[#allocation5 + $0x94] ss:$12 sps:$4 sm:$0xff]  }
  0x3c   :  { %v2066_v13 = vld [vmem:[#allocation5 + $0x484] ss:$12 sps:$4 sm:$0xff]   ;;  %v2070_v15 = vld [vmem:[#allocation5 + $0x480] ss:$12 sps:$4 sm:$0xff]   ;;  %v2072_v16 = vld [vmem:[#allocation5 + $0xc8] ss:$12 sps:$4 sm:$0xff]  }
  0x3d   :  { %1079 = vmatpush1.bf16.msra.mxu0 %v2029_v4  ;;  %1199 = vmatprep.subr.bf16.mxu1 %v2066_v13  ;;  %v2044_v17 = vld [vmem:[#allocation5 + $0x90] ss:$12 sps:$4 sm:$0xff]   ;;  %vm1072_vm0 = vcmask 130048   ;;  %v2045_v19 = vld [vmem:[#allocation5 + $0xac] ss:$12 sps:$4 sm:$0xff]   ;;  %vm2347_vm1 = vmmov 0  }
  0x3e   :  { %1080 = vmatprep.subr.bf16.mxu0 %v2030_v5  ;;  %1200 = vmatpush1.bf16.msra.mxu1 %v2070_v15  ;;  %v2075_v21 = vld [vmem:[#allocation5 + $0x8] ss:$12 sps:$4 sm:$0xff]   ;;  %v2077_v22 = vld [vmem:[#allocation5 + $0xe0] ss:$12 sps:$4 sm:$0xff]   ;;  %v2048_v26 = vld [vmem:[#allocation5 + $0xc4] ss:$12 sps:$4 sm:$0xff]  }
  0x3f   :  { %1876 = vmatprep.subr.bf16.mxu1 %v2072_v16  ;;  %v62_v23 = vld [vmem:[#allocation2 + $0x8] sm:$0xff]  ;;  %v2081_v27 = vld [vmem:[#allocation5 + $0x20] ss:$12 sps:$4 sm:$0xff]   ;;  %v2082_v28 = vld [vmem:[#allocation5 + $0xf8] ss:$12 sps:$4 sm:$0xff]   ;;  %s2348_s8 = smov [#allocation8]  }
  0x40   :  { %v2047_v24 = vld [vmem:[#allocation5 + $0xa8] ss:$12 sps:$4 sm:$0xff]   ;;  %v69_v25 = vpack.c.bf16 %v62_v23, %v62_v23  ;;  %v2050_v29 = vld [vmem:[#allocation5 + $0xc0] ss:$12 sps:$4 sm:$0xff]   ;;  %v2086_v31 = vld [vmem:[#allocation5 + $0x38] ss:$12 sps:$4 sm:$0xff]  }
  0x41   :  { %1081 = vmatpush1.bf16.msra.mxu0 %v2032_v6  ;;  %1849 = vmatmul.mubr.msk.bf16.vlgmr.msra.gmra.mrb[0].mxu1 %vm1072_vm0, %v2415_v20  ;;  %v2051_v30 = vld [vmem:[#allocation5 + $0xdc] ss:$12 sps:$4 sm:$0xff]   ;;  %v2053_v33 = vld [vmem:[#allocation5 + $0xd8] ss:$12 sps:$4 sm:$0xff]   ;;  %v2054_v34 = vld [vmem:[#allocation5 + $0xf4] ss:$12 sps:$4 sm:$0xff]  }
  0x42   :  { %1082 = vmatprep.subr.bf16.mxu0 %v2033_v7  ;;  %1877 = vmatpush3.bf16.msra.mxu1 %v2075_v21  ;;  %v2087_v32 = vld [vmem:[#allocation5 + $0x110] ss:$12 sps:$4 sm:$0xff]   ;;  %v2092_v36 = vld [vmem:[#allocation5 + $0x128] ss:$12 sps:$4 sm:$0xff]   ;;  %v2057_v38 = vld [vmem:[#allocation5 + $0x10c] ss:$12 sps:$4 sm:$0xff]  }
  0x43   :  { %1878 = vmatprep.subr.bf16.mxu1 %v2077_v22  ;;  %1108 = vmatprep.mubr.bf16.mxu0 %v69_v25  ;;  %v2091_v35 = vld [vmem:[#allocation5 + $0x50] ss:$12 sps:$4 sm:$0xff]   ;;  %v2096_v39 = vld [vmem:[#allocation5 + $0x68] ss:$12 sps:$4 sm:$0xff]   ;;  %v2097_v40 = vld [vmem:[#allocation5 + $0x140] ss:$12 sps:$4 sm:$0xff]  }
  0x44   :  { %1272 = vmatprep.mubr.bf16.mxu1 %v69_v25  ;;  %v2056_v37 = vld [vmem:[#allocation5 + $0xf0] ss:$12 sps:$4 sm:$0xff]   ;;  %v2059_v41 = vld [vmem:[#allocation5 + $0x108] ss:$12 sps:$4 sm:$0xff]   ;;  %v2101_v42 = vld [vmem:[#allocation5 + $0x80] ss:$12 sps:$4 sm:$0xff]  }
  0x45   :  { %1083 = vmatpush1.bf16.msra.mxu0 %v2035_v8  ;;  %v2060_v43 = vld [vmem:[#allocation5 + $0x124] ss:$12 sps:$4 sm:$0xff]   ;;  %v2062_v45 = vld [vmem:[#allocation5 + $0x120] ss:$12 sps:$4 sm:$0xff]   ;;  %v2063_v46 = vld [vmem:[#allocation5 + $0x13c] ss:$12 sps:$4 sm:$0xff]  }
  0x46   :  { %1084 = vmatprep.subr.bf16.mxu0 %v2036_v9  ;;  %1879 = vmatpush3.bf16.msra.mxu1 %v2081_v27  ;;  %v2102_v44 = vld [vmem:[#allocation5 + $0x158] ss:$12 sps:$4 sm:$0xff]   ;;  %v2107_v48 = vld [vmem:[#allocation5 + $0x170] ss:$12 sps:$4 sm:$0xff]   ;;  %v2068_v50 = vld [vmem:[#allocation5 + $0x154] ss:$12 sps:$4 sm:$0xff]  }
  0x47   :  { %1880 = vmatprep.subr.bf16.mxu1 %v2082_v28  ;;  %v2106_v47 = vld [vmem:[#allocation5 + $0x98] ss:$12 sps:$4 sm:$0xff]   ;;  %v2111_v51 = vld [vmem:[#allocation5 + $0xb0] ss:$12 sps:$4 sm:$0xff]   ;;  %v2112_v52 = vld [vmem:[#allocation5 + $0x248] ss:$12 sps:$4 sm:$0xff]  }
  0x48   :  { %v2065_v49 = vld [vmem:[#allocation5 + $0x138] ss:$12 sps:$4 sm:$0xff]   ;;  %v61_v53 = vld [vmem:[#allocation2] sm:$0xff]  ;;  %v2071_v54 = vld [vmem:[#allocation5 + $0x150] ss:$12 sps:$4 sm:$0xff]   ;;  %s1692_s9 = sshll.u32 %s2348_s8, 4  ;;  %s1693_s9 = int_to_ptr.vmem [resolvable:$true] %s1692_s9 }
  0x49   :  { %1085 = vmatpush1.bf16.msra.mxu0 %v2038_v10  ;;  %v2073_v55 = vld [vmem:[#allocation5 + $0x16c] ss:$12 sps:$4 sm:$0xff]   ;;  %v2116_v56 = vld [vmem:[#allocation5 + $0x188] ss:$12 sps:$4 sm:$0xff]   ;;  %v68_v57 = vpack.c.bf16 %v61_v53, %v61_v53  ;;  %v2080_v60 = vld [vmem:[#allocation5 + $0x184] ss:$12 sps:$4 sm:$0xff]   ;;  %p2315_p11 = scmp.lt.s32.totalorder %s1693_s9, %s1693_s9 }
  0x4a   :  { %1086 = vmatprep.subr.bf16.mxu0 %v2039_v11  ;;  %1881 = vmatpush3.bf16.msra.mxu1 %v2086_v31  ;;  %v2117_v58 = vld [vmem:[#allocation5 + $0x260] ss:$12 sps:$4 sm:$0xff]   ;;  %v2076_v59 = vld [vmem:[#allocation5 + $0x168] ss:$12 sps:$4 sm:$0xff]   ;;  %v2122_v62 = vld [vmem:[#allocation5 + $0x278] ss:$12 sps:$4 sm:$0xff]  }
  0x4b   :  { %1882 = vmatprep.subr.bf16.mxu1 %v2087_v32  ;;  %v2121_v61 = vld [vmem:[#allocation5 + $0x1a0] ss:$12 sps:$4 sm:$0xff]   ;;  %v2126_v0 = vld [vmem:[#allocation5 + $0x1b8] ss:$12 sps:$4 sm:$0xff]   ;;  %v2085_v1 = vld [vmem:[#allocation5 + $0x19c] ss:$12 sps:$4 sm:$0xff]  }
  0x4c   :  { %v2078_v63 = vld [vmem:[#allocation5 + $0x180] ss:$12 sps:$4 sm:$0xff]   ;;  %v2127_v2 = vld [vmem:[#allocation5 + $0x290] ss:$12 sps:$4 sm:$0xff]   ;;  %v2083_v3 = vld [vmem:[#allocation5 + $0x198] ss:$12 sps:$4 sm:$0xff]  }
  0x4d   :  { %1087 = vmatpush1.bf16.msra.mxu0 %v2041_v12  ;;  %v2090_v4 = vld [vmem:[#allocation5 + $0x1b4] ss:$12 sps:$4 sm:$0xff]   ;;  %v2131_v5 = vld [vmem:[#allocation5 + $0x1d0] ss:$12 sps:$4 sm:$0xff]   ;;  %v2095_v8 = vld [vmem:[#allocation5 + $0x1cc] ss:$12 sps:$4 sm:$0xff]  }
  0x4e   :  { %1088 = vmatprep.subr.bf16.mxu0 %v2042_v14  ;;  %1883 = vmatpush3.bf16.msra.mxu1 %v2091_v35  ;;  %v2132_v6 = vld [vmem:[#allocation5 + $0x2a8] ss:$12 sps:$4 sm:$0xff]   ;;  %v2088_v7 = vld [vmem:[#allocation5 + $0x1b0] ss:$12 sps:$4 sm:$0xff]   ;;  %v2137_v10 = vld [vmem:[#allocation5 + $0x2c0] ss:$12 sps:$4 sm:$0xff]  }
  0x4f   :  { %1884 = vmatprep.subr.bf16.mxu1 %v2092_v36  ;;  %v2136_v9 = vld [vmem:[#allocation5 + $0x1e8] ss:$12 sps:$4 sm:$0xff]   ;;  %v2100_v12 = vld [vmem:[#allocation5 + $0x1e4] ss:$12 sps:$4 sm:$0xff]   ;;  %v2141_v13 = vld [vmem:[#allocation5 + $0x200] ss:$12 sps:$4 sm:$0xff]  }
  0x50   :  { %v2093_v11 = vld [vmem:[#allocation5 + $0x1c8] ss:$12 sps:$4 sm:$0xff]   ;;  %v64_v14 = vld [vmem:[#allocation2 + $0x18] sm:$0xff]  ;;  %v2147_v21 = vld [vmem:[#allocation5 + $0x2f0] ss:$12 sps:$4 sm:$0xff]   ;;  %s2310_s10 = scalar_lea.vmem %s1693_s9, 128 }
  0x51   :  { %1089 = vmatpush1.bf16.msra.mxu0 %v2044_v17  ;;  %v2142_v15 = vld [vmem:[#allocation5 + $0x2d8] ss:$12 sps:$4 sm:$0xff]   ;;  %v71_v16 = vpack.c.bf16 %v64_v14, %v64_v14  ;;  %v2098_v17 = vld [vmem:[#allocation5 + $0x1e0] ss:$12 sps:$4 sm:$0xff]   ;;  %v2105_v18 = vld [vmem:[#allocation5 + $0x1fc] ss:$12 sps:$4 sm:$0xff]   ;;  %p2311_p10 = scmp.ne.s32.totalorder %s1693_s9, %s2310_s10  ;;  %p2316_p12 = scmp.lt.s32.totalorder %s2310_s10, %s2310_s10 }
  0x52   :  { %1090 = vmatprep.subr.bf16.mxu0 %v2045_v19  ;;  %1885 = vmatpush3.bf16.msra.mxu1 %v2096_v39  ;;  %v2146_v19 = vld [vmem:[#allocation5 + $0x218] ss:$12 sps:$4 sm:$0xff]   ;;  %v2110_v23 = vld [vmem:[#allocation5 + $0x214] ss:$12 sps:$4 sm:$0xff]   ;;  %v2108_v27 = vld [vmem:[#allocation5 + $0x210] ss:$12 sps:$4 sm:$0xff]  }
  0x53   :  { %1886 = vmatprep.subr.bf16.mxu1 %v2097_v40  ;;  %v2103_v22 = vld [vmem:[#allocation5 + $0x1f8] ss:$12 sps:$4 sm:$0xff]   ;;  %v2157_v31 = vld [vmem:[#allocation5 + $0x3e0] ss:$12 sps:$4 sm:$0xff]   ;;  %v2113_v32 = vld [vmem:[#allocation5 + $0x228] ss:$12 sps:$4 sm:$0xff]   ;;  %p2317_p13 = por %p2316_p12, %p2315_p11 }
  0x54   :  { %v63_v25 = vld [vmem:[#allocation2 + $0x10] sm:$0xff]  ;;  %v2118_v36 = vld [vmem:[#allocation5 + $0x240] ss:$12 sps:$4 sm:$0xff]  }
  0x55   :  { %1091 = vmatpush1.bf16.msra.mxu0 %v2047_v24  ;;  %v2151_v24 = vld [vmem:[#allocation5 + $0x230] ss:$12 sps:$4 sm:$0xff]   ;;  %v2419_v28 = vpack.c.bf16 %v63_v25, %v63_v25  ;;  %v2162_v35 = vld [vmem:[#allocation5 + $0x3f8] ss:$12 sps:$4 sm:$0xff]   ;;  %p2318_p0 = pnand %p2317_p13, %p2311_p10 }
  0x56   :  { %1092 = vmatprep.subr.bf16.mxu0 %v2048_v26  ;;  %1887 = vmatpush3.bf16.msra.mxu1 %v2101_v42  ;;  %v2152_v26 = vld [vmem:[#allocation5 + $0x3c8] ss:$12 sps:$4 sm:$0xff]   ;;  %v2167_v39 = vld [vmem:[#allocation5 + $0x410] ss:$12 sps:$4 sm:$0xff]   ;;  %v2123_v40 = vld [vmem:[#allocation5 + $0x258] ss:$12 sps:$4 sm:$0xff]  }
  0x57   :  { %1888 = vmatprep.subr.bf16.mxu1 %v2102_v44  ;;  %v2171_v42 = vld [vmem:[#allocation5 + $0x350] ss:$12 sps:$4 sm:$0xff]   ;;  %v2182_v53 = vld [vmem:[#allocation5 + $0x458] ss:$12 sps:$4 sm:$0xff]  }
  0x58   :  { %v2128_v44 = vld [vmem:[#allocation5 + $0x270] ss:$12 sps:$4 sm:$0xff]  }
  0x59   :  { %1093 = vmatpush1.bf16.msra.mxu0 %v2050_v29  ;;  %v2156_v29 = vld [vmem:[#allocation5 + $0x308] ss:$12 sps:$4 sm:$0xff]   ;;  %v2202_v25 = vld [vmem:[#allocation5 + $0x3f0] ss:$12 sps:$4 sm:$0xff]  }
  0x5a   :  { %1094 = vmatprep.subr.bf16.mxu0 %v2051_v30  ;;  %1889 = vmatpush3.bf16.msra.mxu1 %v2106_v47  ;;  %v2115_v30 = vld [vmem:[#allocation5 + $0x22c] ss:$12 sps:$4 sm:$0xff]   ;;  %v2185_v14 = vld [vmem:[#allocation5 + $0x37c] ss:$12 sps:$4 sm:$0xff]  }
  0x5b   :  { %1890 = vmatprep.subr.bf16.mxu1 %v2107_v48  ;;  %v2135_v47 = vld [vmem:[#allocation5 + $0x28c] ss:$12 sps:$4 sm:$0xff]  }
  0x5c   :  { %v2177_v48 = vld [vmem:[#allocation5 + $0x440] ss:$12 sps:$4 sm:$0xff]  }
  0x5d   :  { %1095 = vmatpush1.bf16.msra.mxu0 %v2053_v33  ;;  %v2120_v33 = vld [vmem:[#allocation5 + $0x244] ss:$12 sps:$4 sm:$0xff]  }
  0x5e   :  { %1096 = vmatprep.subr.bf16.mxu0 %v2054_v34  ;;  %1891 = vmatpush3.bf16.msra.mxu1 %v2111_v51  ;;  %v2161_v34 = vld [vmem:[#allocation5 + $0x320] ss:$12 sps:$4 sm:$0xff]  }
  0x5f   :  { %1898 = vmatprep.subr.bf16.mxu1 %v2112_v52  ;;  %v2181_v51 = vld [vmem:[#allocation5 + $0x380] ss:$12 sps:$4 sm:$0xff]   ;;  %v2140_v52 = vld [vmem:[#allocation5 + $0x2a4] ss:$12 sps:$4 sm:$0xff]  }
  0x61   :  { %1097 = vmatpush1.bf16.msra.mxu0 %v2056_v37  ;;  %1273 = vmatmul.mubr.bf16.vlgmr.msra.gmra.mrb[4].mxu1 %v68_v57  ;;  %v2125_v37 = vld [vmem:[#allocation5 + $0x25c] ss:$12 sps:$4 sm:$0xff]  }
  0x62   :  { %1098 = vmatprep.subr.bf16.mxu0 %v2057_v38  ;;  %1899 = vmatpush3.bf16.msra.mxu1 %v2116_v56  ;;  %v2166_v38 = vld [vmem:[#allocation5 + $0x338] ss:$12 sps:$4 sm:$0xff]   ;;  %v2145_v56 = vld [vmem:[#allocation5 + $0x2bc] ss:$12 sps:$4 sm:$0xff]  }
  0x63   :  { %1900 = vmatprep.subr.bf16.mxu1 %v2117_v58  ;;  %1312 = vmatprep.mubr.bf16.mxu1 %v71_v16  ;;  %v2143_v58 = vld [vmem:[#allocation5 + $0x2b8] ss:$12 sps:$4 sm:$0xff]  }
  0x65   :  { %1099 = vmatpush1.bf16.msra.mxu0 %v2059_v41  ;;  %v2130_v41 = vld [vmem:[#allocation5 + $0x274] ss:$12 sps:$4 sm:$0xff]  }
  0x66   :  { %1100 = vmatprep.subr.bf16.mxu0 %v2060_v43  ;;  %1901 = vmatpush3.bf16.msra.mxu1 %v2121_v61  ;;  %v2172_v43 = vld [vmem:[#allocation5 + $0x428] ss:$12 sps:$4 sm:$0xff]  }
  0x67   :  { %1902 = vmatprep.subr.bf16.mxu1 %v2122_v62  ;;  %v2150_v61 = vld [vmem:[#allocation5 + $0x2d4] ss:$12 sps:$4 sm:$0xff]   ;;  %v2148_v62 = vld [vmem:[#allocation5 + $0x2d0] ss:$12 sps:$4 sm:$0xff]  }
  0x69   :  { %1101 = vmatpush1.bf16.msra.mxu0 %v2062_v45  ;;  %v2176_v45 = vld [vmem:[#allocation5 + $0x368] ss:$12 sps:$4 sm:$0xff]  }
  0x6a   :  { %1102 = vmatprep.subr.bf16.mxu0 %v2063_v46  ;;  %1903 = vmatpush3.bf16.msra.mxu1 %v2126_v0  ;;  %v66_v46 = vld [vmem:[#allocation2 + $0x28] sm:$0xff]  ;;  %v2155_v0 = vld [vmem:[#allocation5 + $0x2ec] ss:$12 sps:$4 sm:$0xff]  }
  0x6b   :  { %1904 = vmatprep.subr.bf16.mxu1 %v2127_v2  ;;  %v2346_v2 = vmov 0.0  }
  0x6d   :  { %1103 = vmatpush1.bf16.msra.mxu0 %v2065_v49  ;;  %v73_v49 = vpack.c.bf16 %v66_v46, %v66_v46  ;;  %v2230_v46 = vld [vmem:[#allocation7 + $0x68] sm:$0xff]  }
  0x6e   :  { %1104 = vmatprep.subr.bf16.mxu0 %v2068_v50  ;;  %1905 = vmatpush3.bf16.msra.mxu1 %v2131_v5  ;;  %v2133_v50 = vld [vmem:[#allocation5 + $0x288] ss:$12 sps:$4 sm:$0xff]   ;;  %v2158_v5 = vld [vmem:[#allocation5 + $0x300] ss:$12 sps:$4 sm:$0xff]  }
  0x6f   :  { %1906 = vmatprep.subr.bf16.mxu1 %v2132_v6  ;;  %v2165_v6 = vld [vmem:[#allocation5 + $0x31c] ss:$12 sps:$4 sm:$0xff]  }
  0x71   :  { %1105 = vmatpush1.bf16.msra.mxu0 %v2071_v54  ;;  %v2138_v54 = vld [vmem:[#allocation5 + $0x2a0] ss:$12 sps:$4 sm:$0xff]  }
  0x72   :  { %1106 = vmatprep.subr.bf16.mxu0 %v2073_v55  ;;  %1907 = vmatpush3.bf16.msra.mxu1 %v2136_v9  ;;  %v2186_v55 = vld [vmem:[#allocation5 + $0x398] ss:$12 sps:$4 sm:$0xff]   ;;  %v2168_v9 = vld [vmem:[#allocation5 + $0x330] ss:$12 sps:$4 sm:$0xff]  }
  0x73   :  { %1908 = vmatprep.subr.bf16.mxu1 %v2137_v10  ;;  %v2175_v10 = vld [vmem:[#allocation5 + $0x34c] ss:$12 sps:$4 sm:$0xff]  }
  0x75   :  { %1107 = vmatpush1.bf16.msra.mxu0 %v2076_v59  ;;  %v2191_v59 = vld [vmem:[#allocation5 + $0x3b0] ss:$12 sps:$4 sm:$0xff]  }
  0x76   :  { %1117 = vmatprep.subr.bf16.mxu0 %v2080_v60  ;;  %1909 = vmatpush3.bf16.msra.mxu1 %v2141_v13  ;;  %v65_v60 = vld [vmem:[#allocation2 + $0x20] sm:$0xff] }
  0x77   :  { %1910 = vmatprep.subr.bf16.mxu1 %v2142_v15  ;;  %v2178_v13 = vld [vmem:[#allocation5 + $0x360] ss:$12 sps:$4 sm:$0xff]   ;;  %v2183_v15 = vld [vmem:[#allocation5 + $0x378] ss:$12 sps:$4 sm:$0xff]  }
  0x78   :  { %1109 = vmatmul.mubr.bf16.vlgmr.msra.gmra.mrb[0].mxu0 %v68_v57  ;;  %v2187_v57 = vld [vmem:[#allocation5 + $0x470] ss:$12 sps:$4 sm:$0xff]  }
  0x79   :  { %1118 = vmatpush1.bf16.msra.mxu0 %v2078_v63  ;;  %1149 = vmatprep.mubr.bf16.mxu0 %v71_v16  ;;  %v2198_v63 = vld [vmem:[#allocation5 + $0x488] ss:$12 sps:$4 sm:$0xff]   ;;  %v2188_v16 = vld [vmem:[#allocation5 + $0x390] ss:$12 sps:$4 sm:$0xff]  }
  0x7a   :  { %1119 = vmatprep.subr.bf16.mxu0 %v2085_v1  ;;  %1911 = vmatpush3.bf16.msra.mxu1 %v2146_v19  ;;  %v2422_v1 = vpack.c.bf16 %v65_v60, %v65_v60  ;;  %v2197_v19 = vld [vmem:[#allocation5 + $0x3c4] ss:$12 sps:$4 sm:$0xff]  }
  0x7b   :  { %1912 = vmatprep.subr.bf16.mxu1 %v2147_v21  ;;  %v2195_v21 = vld [vmem:[#allocation5 + $0x3c0] ss:$12 sps:$4 sm:$0xff]   ;;  %v2235_v60 = vld [vmem:[#allocation7 + $0x38] sm:$0xff]  }
  0x7d   :  { %1120 = vmatpush1.bf16.msra.mxu0 %v2083_v3  ;;  %v2153_v3 = vld [vmem:[#allocation5 + $0x2e8] ss:$12 sps:$4 sm:$0xff]  }
  0x7e   :  { %1121 = vmatprep.subr.bf16.mxu0 %v2090_v4  ;;  %1913 = vmatpush3.bf16.msra.mxu1 %v2151_v24  ;;  %v2160_v4 = vld [vmem:[#allocation5 + $0x304] ss:$12 sps:$4 sm:$0xff]   ;;  %v2204_v24 = vld [vmem:[#allocation5 + $0x3f4] ss:$12 sps:$4 sm:$0xff]  }
  0x7f   :  { %1920 = vmatprep.subr.bf16.mxu1 %v2152_v26  ;;  %v2207_v26 = vld [vmem:[#allocation5 + $0x40c] ss:$12 sps:$4 sm:$0xff]  }
  0x81   :  { %1122 = vmatpush1.bf16.msra.mxu0 %v2088_v7  ;;  %1313 = vmatmul.mubr.bf16.vlgmr.msra.gmra.mrb[8].mxu1 %v2419_v28  ;;  %v2163_v7 = vld [vmem:[#allocation5 + $0x318] ss:$12 sps:$4 sm:$0xff]  }
  0x82   :  { %1123 = vmatprep.subr.bf16.mxu0 %v2095_v8  ;;  %1921 = vmatpush3.bf16.msra.mxu1 %v2156_v29  ;;  %v2170_v8 = vld [vmem:[#allocation5 + $0x334] ss:$12 sps:$4 sm:$0xff]  }
  0x83   :  { %1922 = vmatprep.subr.bf16.mxu1 %v2157_v31  ;;  %1352 = vmatprep.mubr.bf16.mxu1 %v73_v49  ;;  %v2208_v29 = vld [vmem:[#allocation5 + $0x420] ss:$12 sps:$4 sm:$0xff]   ;;  %v2211_v31 = vld [vmem:[#allocation5 + $0x438] ss:$12 sps:$4 sm:$0xff]  }
  0x85   :  { %1124 = vmatpush1.bf16.msra.mxu0 %v2093_v11  ;;  %v2173_v11 = vld [vmem:[#allocation5 + $0x348] ss:$12 sps:$4 sm:$0xff]  }
  0x86   :  { %1125 = vmatprep.subr.bf16.mxu0 %v2100_v12  ;;  %1923 = vmatpush3.bf16.msra.mxu1 %v2161_v34  ;;  %v2180_v12 = vld [vmem:[#allocation5 + $0x364] ss:$12 sps:$4 sm:$0xff]   ;;  %v2219_v34 = vld [vmem:[#allocation5 + $0x46c] ss:$12 sps:$4 sm:$0xff]  }
  0x87   :  { %1924 = vmatprep.subr.bf16.mxu1 %v2162_v35  ;;  %v2217_v35 = vld [vmem:[#allocation5 + $0x468] ss:$12 sps:$4 sm:$0xff]  }
  0x89   :  { %1126 = vmatpush1.bf16.msra.mxu0 %v2098_v17  ;;  %v2194_v17 = vld [vmem:[#allocation5 + $0x3ac] ss:$12 sps:$4 sm:$0xff]  }
  0x8a   :  { %1127 = vmatprep.subr.bf16.mxu0 %v2105_v18  ;;  %1925 = vmatpush3.bf16.msra.mxu1 %v2166_v38  ;;  %v2192_v18 = vld [vmem:[#allocation5 + $0x3a8] ss:$12 sps:$4 sm:$0xff]   ;;  %v2222_v38 = vld [vmem:[#allocation7 + $0x48] sm:$0xff]  }
  0x8b   :  { %1926 = vmatprep.subr.bf16.mxu1 %v2167_v39  ;;  %v2223_v39 = vld [vmem:[#allocation7 + $0x8] sm:$0xff]  }
  0x8d   :  { %1128 = vmatpush1.bf16.msra.mxu0 %v2103_v22  ;;  %v2201_v22 = vld [vmem:[#allocation5 + $0x3dc] ss:$12 sps:$4 sm:$0xff]  }
  0x8e   :  { %1129 = vmatprep.subr.bf16.mxu0 %v2110_v23  ;;  %1927 = vmatpush3.bf16.msra.mxu1 %v2171_v42  ;;  %v2199_v23 = vld [vmem:[#allocation5 + $0x3d8] ss:$12 sps:$4 sm:$0xff]   ;;  %v2226_v42 = vld [vmem:[#allocation7 + $0x58] sm:$0xff]  }
  0x8f   :  { %1928 = vmatprep.subr.bf16.mxu1 %v2172_v43  ;;  %v2227_v43 = vld [vmem:[#allocation7 + $0x18] sm:$0xff]  }
  0x91   :  { %1130 = vmatpush1.bf16.msra.mxu0 %v2108_v27  ;;  %v2205_v27 = vld [vmem:[#allocation5 + $0x408] ss:$12 sps:$4 sm:$0xff]  }
  0x92   :  { %1131 = vmatprep.subr.bf16.mxu0 %v2115_v30  ;;  %1929 = vmatpush3.bf16.msra.mxu1 %v2176_v45  ;;  %v2213_v30 = vld [vmem:[#allocation5 + $0x43c] ss:$12 sps:$4 sm:$0xff]  }
  0x93   :  { %1930 = vmatprep.subr.bf16.mxu1 %v2177_v48  ;;  %v2229_v45 = vld [vmem:[#allocation7 + $0x20] sm:$0xff]   ;;  %v2231_v48 = vld [vmem:[#allocation7 + $0x28] sm:$0xff]  }
  0x95   :  { %1132 = vmatpush1.bf16.msra.mxu0 %v2113_v32  ;;  %v2216_v32 = vld [vmem:[#allocation5 + $0x454] ss:$12 sps:$4 sm:$0xff]  }
  0x96   :  { %1133 = vmatprep.subr.bf16.mxu0 %v2120_v33  ;;  %1931 = vmatpush3.bf16.msra.mxu1 %v2181_v51  ;;  %v2214_v33 = vld [vmem:[#allocation5 + $0x450] ss:$12 sps:$4 sm:$0xff]  }
  0x97   :  { %1932 = vmatprep.subr.bf16.mxu1 %v2182_v53 }
  0x99   :  { %1134 = vmatpush1.bf16.msra.mxu0 %v2118_v36  ;;  %v2220_v36 = vld [vmem:[#allocation7 + $0x40] sm:$0xff]  }
  0x9a   :  { %1135 = vmatprep.subr.bf16.mxu0 %v2125_v37  ;;  %1933 = vmatpush3.bf16.msra.mxu1 %v2186_v55  ;;  %v2221_v37 = vld [vmem:[#allocation7] sm:$0xff]  }
  0x9b   :  { %1934 = vmatprep.subr.bf16.mxu1 %v2187_v57  ;;  %v2232_v57 = vld [vmem:[#allocation7 + $0x70] sm:$0xff]  }
  0x9d   :  { %1136 = vmatpush1.bf16.msra.mxu0 %v2123_v40  ;;  %v2224_v40 = vld [vmem:[#allocation7 + $0x50] sm:$0xff]  }
  0x9e   :  { %1137 = vmatprep.subr.bf16.mxu0 %v2130_v41  ;;  %1935 = vmatpush3.bf16.msra.mxu1 %v2191_v59  ;;  %v2225_v41 = vld [vmem:[#allocation7 + $0x10] sm:$0xff]   ;;  %v2234_v59 = vld [vmem:[#allocation7 + $0x78] sm:$0xff]  }
  0x9f   :  { %1975 = vmatprep.subr.bf16.mxu1 %v2346_v2 }
  0xa1   :  { %1138 = vmatpush1.bf16.msra.mxu0 %v2128_v44  ;;  %1353 = vmatmul.mubr.bf16.vlgmr.msra.gmra.mrb[12].mxu1 %v2422_v1  ;;  %v2228_v44 = vld [vmem:[#allocation7 + $0x60] sm:$0xff]  }
  0xa2   :  { %1139 = vmatprep.subr.bf16.mxu0 %v2135_v47  ;;  %1976 = vmatpush3.bf16.msra.mxu1 %v2198_v63 }
  0xa3   :  { %1977 = vmatprep.mubr.msk.bf16.mxu1 %vm2347_vm1, %v2346_v2  ;;  %1944 = vmatprep.subr.bf16.mxu1 %v2220_v36  ;;  %v2236_v36 = vld [vmem:[#allocation7 + $0x80] sm:$0xff]  }
  0xa5   :  { %1140 = vmatpush1.bf16.msra.mxu0 %v2133_v50 }
  0xa6   :  { %1141 = vmatprep.subr.bf16.mxu0 %v2140_v52 }
  0xa9   :  { %1142 = vmatpush1.bf16.msra.mxu0 %v2138_v54  ;;  %1978 = vmatmul.mubr.msk.bf16.vlgmr.msra.gmra.mrb[16].mxu1 %vm1072_vm0, %v2415_v20  ;;  %v2190_v20 = vld [vmem:[#allocation5 + $0x394] ss:$12 sps:$4 sm:$0xff]  }
  0xaa   :  { %1143 = vmatprep.subr.bf16.mxu0 %v2145_v56  ;;  %1945 = vmatpush3.bf16.msra.mxu1 %v2221_v37 }
  0xab   :  { %1946 = vmatprep.subr.bf16.mxu1 %v2222_v38  ;;  %v2237_v38 = vld [vmem:[#allocation7 + $0x88] sm:$0xff]  }
  0xad   :  { %1144 = vmatpush1.bf16.msra.mxu0 %v2143_v58  ;;  %v2233_v58 = vld [vmem:[#allocation7 + $0x30] sm:$0xff]  }
  0xae   :  { %1145 = vmatprep.subr.bf16.mxu0 %v2150_v61  ;;  %1947 = vmatpush3.bf16.msra.mxu1 %v2223_v39  ;;  %v273_v61 = vlaneseq  ;;  %v2238_v39 = vld [vmem:[#allocation7 + $0x90] sm:$0xff]  }
  0xaf   :  { %1948 = vmatprep.subr.bf16.mxu1 %v2224_v40  ;;  %v2239_v40 = vld [vmem:[#allocation7 + $0x98] sm:$0xff]  }
  0xb1   :  { %1146 = vmatpush1.bf16.msra.mxu0 %v2148_v62  ;;  %v274_v62 = vshrl.u32 %v273_v61, 7 }
  0xb2   :  { %1147 = vmatprep.subr.bf16.mxu0 %v2155_v0  ;;  %1949 = vmatpush3.bf16.msra.mxu1 %v2225_v41  ;;  %v271_v0 = vld [vmem:[%s2462_s2] sm:$0x7]  ;;  %v2240_v41 = vld [vmem:[#allocation7 + $0xa0] sm:$0xff]  }
  0xb3   :  { %1950 = vmatprep.subr.bf16.mxu1 %v2226_v42  ;;  %v283_v63 = vsub.s32 2, %v274_v62  ;;  %v2241_v42 = vld [vmem:[#allocation7 + $0xa8] sm:$0xff]  }
  0xb5   :  { %1148 = vmatpush1.bf16.msra.mxu0 %v2153_v3 }
  0xb6   :  { %1158 = vmatprep.subr.bf16.mxu0 %v2160_v4  ;;  %1951 = vmatpush3.bf16.msra.mxu1 %v2227_v43  ;;  %v2242_v43 = vld [vmem:[#allocation7 + $0xb0] sm:$0xff]  }
  0xb7   :  { %1952 = vmatprep.subr.bf16.mxu1 %v2228_v44  ;;  %v2243_v44 = vld [vmem:[#allocation7 + $0xb8] sm:$0xff]  }
  0xb8   :  { %1150 = vmatmul.mubr.bf16.vlgmr.msra.gmra.mrb[0].mxu0 %v2419_v28  ;;  %v2210_v28 = vld [vmem:[#allocation5 + $0x424] ss:$12 sps:$4 sm:$0xff]  }
  0xb9   :  { %1159 = vmatpush1.bf16.msra.mxu0 %v2158_v5  ;;  %1190 = vmatprep.mubr.bf16.mxu0 %v73_v49 }
  0xba   :  { %1160 = vmatprep.subr.bf16.mxu0 %v2165_v6  ;;  %1953 = vmatpush3.bf16.msra.mxu1 %v2229_v45 }
  0xbb   :  { %1954 = vmatprep.subr.bf16.mxu1 %v2230_v46 }
  0xbd   :  { %1161 = vmatpush1.bf16.msra.mxu0 %v2163_v7 }
  0xbe   :  { %1162 = vmatprep.subr.bf16.mxu0 %v2170_v8  ;;  %1955 = vmatpush3.bf16.msra.mxu1 %v2231_v48 }
  0xbf   :  { %1956 = vmatprep.subr.bf16.mxu1 %v2232_v57 }
  0xc1   :  { %1163 = vmatpush1.bf16.msra.mxu0 %v2168_v9 }
  0xc2   :  { %1164 = vmatprep.subr.bf16.mxu0 %v2175_v10  ;;  %1957 = vmatpush3.bf16.msra.mxu1 %v2233_v58 }
  0xc3   :  { %1958 = vmatprep.subr.bf16.mxu1 %v2234_v59 }
  0xc5   :  { %1165 = vmatpush1.bf16.msra.mxu0 %v2173_v11 }
  0xc6   :  { %1166 = vmatprep.subr.bf16.mxu0 %v2180_v12  ;;  %1959 = vmatpush3.bf16.msra.mxu1 %v2235_v60 }
  0xc7   :  { %1981 = vmatprep.subr.bf16.mxu1 %v2346_v2 }
  0xc9   :  { %1167 = vmatpush1.bf16.msra.mxu0 %v2178_v13 }
  0xca   :  { %1168 = vmatprep.subr.bf16.mxu0 %v2185_v14 }
  0xcd   :  { %1169 = vmatpush1.bf16.msra.mxu0 %v2183_v15 }
  0xce   :  { %1170 = vmatprep.subr.bf16.mxu0 %v2190_v20 }
  0xd1   :  { %1171 = vmatpush1.bf16.msra.mxu0 %v2188_v16 }
  0xd2   :  { %1172 = vmatprep.subr.bf16.mxu0 %v2194_v17 }
  0xd5   :  { %1173 = vmatpush1.bf16.msra.mxu0 %v2192_v18 }
  0xd6   :  { %1174 = vmatprep.subr.bf16.mxu0 %v2197_v19 }
  0xd9   :  { %1175 = vmatpush1.bf16.msra.mxu0 %v2195_v21  ;;  %v275_v21 = vsub.s32 0, %v274_v62 }
  0xda   :  { %1176 = vmatprep.subr.bf16.mxu0 %v2201_v22  ;;  %v279_v22 = vsub.s32 1, %v274_v62 }
  0xdd   :  { %1177 = vmatpush1.bf16.msra.mxu0 %v2199_v23  ;;  %v276_v23 = vrot.slane %v271_v0, %v275_v21 }
  0xde   :  { %1178 = vmatprep.subr.bf16.mxu0 %v2204_v24  ;;  %v280_v24 = vrot.slane %v271_v0, %v279_v22 }
  0xe1   :  { %1179 = vmatpush1.bf16.msra.mxu0 %v2202_v25 }
  0xe2   :  { %1180 = vmatprep.subr.bf16.mxu0 %v2207_v26 }
  0xe5   :  { %1181 = vmatpush1.bf16.msra.mxu0 %v2205_v27 }
  0xe6   :  { %1182 = vmatprep.subr.bf16.mxu0 %v2210_v28 }
  0xe9   :  { %1183 = vmatpush1.bf16.msra.mxu0 %v2208_v29 }
  0xea   :  { %1184 = vmatprep.subr.bf16.mxu0 %v2213_v30 }
  0xed   :  { %1185 = vmatpush1.bf16.msra.mxu0 %v2211_v31 }
  0xee   :  { %1186 = vmatprep.subr.bf16.mxu0 %v2216_v32 }
  0xf1   :  { %1187 = vmatpush1.bf16.msra.mxu0 %v2214_v33 }
  0xf2   :  { %1188 = vmatprep.subr.bf16.mxu0 %v2219_v34 }
  0xf5   :  { %1189 = vmatpush1.bf16.msra.mxu0 %v2217_v35 }
  0xf8   :  { %1191 = vmatmul.mubr.bf16.vlgmr.msra.gmra.mrb[0].mxu0 %v2422_v1  ;;  %v284_v1 = vrot.slane %v271_v0, %v283_v63 }
 0x114   :  { %v1233_v47 = vpop.f32.mrb[0].mxu1 }
 0x115   :  { %v1235_v49 = vpop.f32.mrb[1].mxu1 }
 0x116   :  { %v1237_v50 = vpop.f32.mrb[2].mxu1 }
 0x117   :  { %v1238_v51 = vpop.f32.mrb[3].mxu1 }
 0x134   :  { %v1892_v52 = vpop.f32.mrb[4].mxu1 }
 0x135   :  { %v1893_v53 = vpop.f32.mrb[5].mxu1 }
 0x136   :  { %v1894_v54 = vadd.f32 %v1893_v53, %v1892_v52  ;;  %v1895_v55 = vpop.f32.mrb[6].mxu1  ;;  %v1851_v52 = vld [vmem:[%s2464_s4] ss:$0 sm:$0xff] }
 0x137   :  { %v1896_v56 = vpop.f32.mrb[7].mxu1 }
 0x138   :  { %v1275_v3 = vadd.f32 %v1894_v54, %v284_v1 }
 0x154   :  { %v1914_v4 = vpop.f32.mrb[8].mxu1 }
 0x155   :  { %v1915_v5 = vpop.f32.mrb[9].mxu1 }
 0x156   :  { %v1916_v6 = vadd.f32 %v1915_v5, %v1914_v4  ;;  %v1917_v7 = vpop.f32.mrb[10].mxu1 }
 0x157   :  { %v1918_v8 = vpop.f32.mrb[11].mxu1 }
 0x158   :  { %v1315_v9 = vadd.f32 %v1916_v6, %v1275_v3 }
 0x174   :  { %v1936_v10 = vpop.f32.mrb[12].mxu1 }
 0x175   :  { %v1937_v11 = vpop.f32.mrb[13].mxu1 }
 0x176   :  { %v1938_v12 = vadd.f32 %v1937_v11, %v1936_v10  ;;  %v1939_v13 = vpop.f32.mrb[14].mxu1 }
 0x177   :  { %v1940_v14 = vpop.f32.mrb[15].mxu1 }
 0x178   :  { %v1355_v15 = vadd.f32 %v1938_v12, %v1315_v9 }
 0x17c   :  { %v1394_v20 = vpop.f32.mrb[16].mxu1 }
 0x17d   :  { %v1395_v16 = vadd.f32 %v1394_v20, %v1355_v15  ;;  %v1979_v17 = vpop.f32.mrb[17].mxu1 }
 0x17e   :  { %v1397_v18 = vpop.f32.mrb[18].mxu1 }
 0x17f   :  { %v1980_v19 = vpop.f32.mrb[19].mxu1  ;;  %v1402_v45 = vmax.f32 %v1395_v16, 0.0 }
 0x181   :  { %v1405_v46 = vpack.c.bf16 %v1402_v45, %v1402_v45 }
 0x1cb   :  { %v1192_v25 = vpop.f32.mrb[0].mxu0 }
 0x1cc   :  { %v2001_v26 = vadd.f32 %v1192_v25, %v276_v23  ;;  %v1194_v27 = vpop.f32.mrb[1].mxu0 }
 0x1cd   :  { %v2003_v28 = vadd.f32 %v1194_v27, %v280_v24  ;;  %v1196_v29 = vpop.f32.mrb[2].mxu0 }
 0x1ce   :  { %v2002_v30 = vadd.f32 %v2001_v26, %v1233_v47  ;;  %v1197_v31 = vpop.f32.mrb[3].mxu0 }
 0x1cf   :  { %v2004_v32 = vadd.f32 %v2003_v28, %v1235_v49 }
 0x1d0   :  { %v1400_v33 = vmax.f32 %v2002_v30, 0.0 }
 0x1d1   :  { %v1401_v34 = vmax.f32 %v2004_v32, 0.0 }
 0x1d2   :  { %v1403_v37 = vpack.c.bf16 %v1400_v33, %v1400_v33 }
 0x1d3   :  { %v1404_v35 = vpack.c.bf16 %v1401_v34, %v1401_v34 }
 0x1d5   :  { %1637 = vmatprep.mubr.bf16.mxu1 %v1404_v35 }
 0x1d6   :  { %1638 = vmatmul.mubr.bf16.vlgmr.msra.gmra.mrb[20].mxu1 %v1403_v37 }
 0x1d7   :  { %1982 = vmatpush3.bf16.msra.mxu1 %v2236_v36  ;;  %1997 = vmatprep.mubr.msk.bf16.mxu1 %vm2347_vm1, %v2346_v2 }
 0x1d8   :  { %1983 = vmatprep.subr.bf16.mxu1 %v2346_v2 }
 0x1db   :  { %1984 = vmatpush3.bf16.msra.mxu1 %v2237_v38 }
 0x1dc   :  { %1985 = vmatprep.subr.bf16.mxu1 %v2346_v2 }
 0x1df   :  { %1986 = vmatpush3.bf16.msra.mxu1 %v2238_v39 }
 0x1e0   :  { %1987 = vmatprep.subr.bf16.mxu1 %v2346_v2 }
 0x1e3   :  { %1988 = vmatpush3.bf16.msra.mxu1 %v2239_v40 }
 0x1e4   :  { %1989 = vmatprep.subr.bf16.mxu1 %v2346_v2 }
 0x1e7   :  { %1990 = vmatpush3.bf16.msra.mxu1 %v2240_v41 }
 0x1e8   :  { %1991 = vmatprep.subr.bf16.mxu1 %v2346_v2 }
 0x1eb   :  { %1992 = vmatpush3.bf16.msra.mxu1 %v2241_v42 }
 0x1ec   :  { %1993 = vmatprep.subr.bf16.mxu1 %v2346_v2 }
 0x1ef   :  { %1994 = vmatpush3.bf16.msra.mxu1 %v2242_v43 }
 0x1f0   :  { %1995 = vmatprep.subr.bf16.mxu1 %v2346_v2 }
 0x1f3   :  { %1996 = vmatpush3.bf16.msra.mxu1 %v2243_v44 }
 0x1f6   :  { %1998 = vmatmul.mubr.bf16.vlgmr.msra.gmra.mrb[24].mxu1 %v1405_v46 }
 0x2a9   :  { %v1960_v47 = vpop.f32.mrb[20].mxu1 }
 0x2aa   :  { %v1961_v48 = vpop.f32.mrb[21].mxu1 }
 0x2ab   :  { %v1962_v49 = vadd.f32 %v1961_v48, %v1960_v47  ;;  %v1963_v50 = vpop.f32.mrb[22].mxu1 }
 0x2ac   :  { %v1964_v51 = vpop.f32.mrb[23].mxu1 }
 0x2ad   :  { %v1640_v53 = vadd.f32 %v1962_v49, %v1851_v52 }
 0x2c9   :  { %v1679_v54 = vpop.f32.mrb[24].mxu1 }
 0x2ca   :  { %v1680_v55 = vadd.f32 %v1679_v54, %v1640_v53  ;;  %v1999_v56 = vpop.f32.mrb[25].mxu1 }
 0x2cb   :  { %v1682_v2 = vpop.f32.mrb[26].mxu1 }
 0x2cc   :  { %1685 = vst [vmem:[#allocation8] sm:$0xff] %v1680_v55  ;;  %v2000_v57 = vpop.f32.mrb[27].mxu1 }
 0x2cd   :  { %2321 = shalt.err (!%p2318_p0)
}
 0x2ce   :  { %s2322_s4 = scalar_lea.hbm %s2465_s5, 128 }
 0x2cf   :  { %p2323_p1 = scmp.ne.s32.totalorder %s2465_s5, %s2322_s4  ;;  %p2326_p2 = scmp.lt.u32.totalorder %s2322_s4, %s2465_s5 }
 0x2d1   :  { %p2328_p3 = pnand %p2326_p2, %p2323_p1 }
 0x2d3   :  { %2331 = shalt.err (!%p2328_p3)
}
 0x2d4   :  { %1695 = dma.vmem_to_hbm [thread:$0]  %s1693_s9, 128, %s2465_s5, [#allocation4]  }
 0x2d5   :  { %2336 = dma.done.wait [#allocation4], 128  }
 0x2d6   :  { %2337 = vsyncadd [#allocation4], 4294967168 }
 0x2d7   :  { %1699 = vsyncpa [#allocation3], 1 }
 0x2d8   :  { %1700 = vsyncpa [#allocation6], 1 }
 0x2d9   :  { %1701 = vsyncpa [#allocation4], 1 }

</bundles_post_ra>
